<compile_context>
chip_gen: v7x
topology: tpu7x:2x2x1
jax: 0.10.0
libtpu: 0.0.40
codegen_flags: <defaults>
</compile_context>

<pallas_src>
import itertools
from functools import partial

import jax
import jax.numpy as jnp
from jax.experimental import pallas as pl
from jax.experimental.pallas import tpu as pltpu


# ---------------------------------------------------------------------------
# Kernel: T LSTMCell + transition-Linear steps in one grid.
# ---------------------------------------------------------------------------
def _tracker_seq_kernel(x_ref, h0_ref, c0_ref, w_ref, b_ref, wt_ref, bt_ref,
                        h_out_ref, c_out_ref, logit_ref,
                        xh_sc, c_sc, *, kx, hh, hp):
    """One tracker step per grid iteration.

    x_ref   : (1, B, kx)   per-step input [buf_h | stack1_h | stack2_h]
    h0_ref  : (B, hp)      initial hidden (zero-padded to hp lanes)
    c0_ref  : (B, hp)      initial cell   (zero-padded)
    w_ref   : (kx+hh, 4*hp) bf16 fused [W_ih; W_hh], per-gate cols padded
    b_ref   : (1, 4*hp)     f32 fused bias (b_ih + b_hh), per-gate padded
    wt_ref  : (hp, hp)      bf16 transition weight (real block [:hh, :4])
    bt_ref  : (1, hp)       f32 transition bias (real cols [:4])
    outputs : h_seq/c_seq/logits (1, B, hp) lane-dense per step
    scratch : xh_sc (B, kx+hh) f32 fused [x | h] buffer; c_sc (B, hp) f32
    """
    t = pl.program_id(0)

    @pl.when(t == 0)
    def _init():
        c_sc[...] = c0_ref[...]
        xh_sc[:, kx:] = h0_ref[:, :hh]

    # New per-step input into the fused contraction buffer (K = kx + hh = 128).
    xh_sc[:, :kx] = x_ref[0]

    # One MXU dot: bf16 inputs, f32 accumulation.
    gates = (jnp.dot(xh_sc[...].astype(jnp.bfloat16), w_ref[...],
                     preferred_element_type=jnp.float32)
             + b_ref[...])

    # Full-vreg (128-lane) gate blocks: [i | f | g | o], PyTorch LSTMCell order.
    i_g = jax.nn.sigmoid(gates[:, 0 * hp:1 * hp])
    f_g = jax.nn.sigmoid(gates[:, 1 * hp:2 * hp])
    g_g = jnp.tanh(gates[:, 2 * hp:3 * hp])
    o_g = jax.nn.sigmoid(gates[:, 3 * hp:4 * hp])

    c_new = f_g * c_sc[...] + i_g * g_g
    h_new = o_g * jnp.tanh(c_new)

    # Carry state in VMEM for the next grid step.
    c_sc[...] = c_new
    xh_sc[:, kx:] = h_new[:, :hh]

    # Lane-dense stores; real data lives in the first hh (resp. 4) columns.
    h_out_ref[0] = h_new
    c_out_ref[0] = c_new
    logit_ref[0] = (jnp.dot(h_new.astype(jnp.bfloat16), wt_ref[...],
                            preferred_element_type=jnp.float32)
                    + bt_ref[...])


@jax.jit
def tracker_run(x_seq, h0, c0, w, b, wt, bt):
    """Run x_seq.shape[0] tracker steps in a single pallas_call.

    x_seq : (T, B, 3*size) f32
    h0,c0 : (B, H) f32
    Returns h_seq (T,B,H), c_seq (T,B,H), logits (T,B,4).
    """
    T, B, kx = x_seq.shape
    hh = h0.shape[1]
    hp = wt.shape[1]

    h0p = jnp.pad(h0, ((0, 0), (0, hp - hh)))
    c0p = jnp.pad(c0, ((0, 0), (0, hp - hh)))

    kernel = partial(_tracker_seq_kernel, kx=kx, hh=hh, hp=hp)
    out_shape = (
        jax.ShapeDtypeStruct((T, B, hp), jnp.float32),   # h per step
        jax.ShapeDtypeStruct((T, B, hp), jnp.float32),   # c per step
        jax.ShapeDtypeStruct((T, B, hp), jnp.float32),   # logits per step
    )
    grid_spec = pltpu.PrefetchScalarGridSpec(
        num_scalar_prefetch=0,
        grid=(T,),
        in_specs=[
            pl.BlockSpec((1, B, kx), lambda t: (t, 0, 0)),      # x_t
            pl.BlockSpec((B, hp), lambda t: (0, 0)),            # h0 (resident)
            pl.BlockSpec((B, hp), lambda t: (0, 0)),            # c0 (resident)
            pl.BlockSpec((kx + hh, 4 * hp), lambda t: (0, 0)),  # fused LSTM W
            pl.BlockSpec((1, 4 * hp), lambda t: (0, 0)),        # fused bias
            pl.BlockSpec((hp, hp), lambda t: (0, 0)),           # transition W
            pl.BlockSpec((1, hp), lambda t: (0, 0)),            # transition b
        ],
        out_specs=(
            pl.BlockSpec((1, B, hp), lambda t: (t, 0, 0)),
            pl.BlockSpec((1, B, hp), lambda t: (t, 0, 0)),
            pl.BlockSpec((1, B, hp), lambda t: (t, 0, 0)),
        ),
        scratch_shapes=[
            pltpu.VMEM((B, kx + hh), jnp.float32),   # fused [x | h] buffer
            pltpu.VMEM((B, hp), jnp.float32),        # carried cell state
        ],
    )
    h_seq, c_seq, logit_seq = pl.pallas_call(
        kernel,
        out_shape=out_shape,
        grid_spec=grid_spec,
        compiler_params=pltpu.CompilerParams(
            dimension_semantics=("arbitrary",)),     # step axis is a recurrence
    )(x_seq, h0p, c0p, w, b, wt, bt)
    return h_seq[:, :, :hh], c_seq[:, :, :hh], logit_seq[:, :, :4]


# ---------------------------------------------------------------------------
# PyTorch-API parity glue (kept outside the kernel on purpose).
# ---------------------------------------------------------------------------
def bundle(lstm_iter):
    if lstm_iter is None:
        return None
    lstm_iter = tuple(lstm_iter)
    if lstm_iter[0] is None:
        return None
    cat = jnp.concatenate(lstm_iter, axis=0)          # (B, 2*size)
    return tuple(jnp.split(cat, 2, axis=1))           # (h, c), each (B, size)


def unbundle(state):
    if state is None:
        return itertools.repeat(None)
    cat = jnp.concatenate(state, axis=1)              # (B, 2*H)
    return jnp.split(cat, cat.shape[0], axis=0)       # B arrays of (1, 2*H)


class Tracker:
    """JAX/Pallas port of the PyTorch SPINN Tracker (forward only)."""

    def __init__(self, size, tracker_size, predict, key):
        self.size = size
        self.state_size = tracker_size
        self.predict = predict
        hh = tracker_size
        in_f = 3 * size
        self.hp = ((hh + 127) // 128) * 128           # per-gate lane padding
        hp = self.hp

        stdv = 1.0 / (hh ** 0.5)
        ks = jax.random.split(key, 6)
        # f32 master parameters (pre-transposed to (in, out)); also used by
        # the pure-JAX reference.
        self.w_ih = jax.random.uniform(ks[0], (in_f, 4 * hh), jnp.float32, -stdv, stdv)
        self.w_hh = jax.random.uniform(ks[1], (hh, 4 * hh), jnp.float32, -stdv, stdv)
        b_ih = jax.random.uniform(ks[2], (4 * hh,), jnp.float32, -stdv, stdv)
        b_hh = jax.random.uniform(ks[3], (4 * hh,), jnp.float32, -stdv, stdv)
        self.b = b_ih + b_hh                          # (4*hh,)
        self.w_t = jax.random.uniform(ks[4], (hh, 4), jnp.float32, -stdv, stdv)
        self.b_t = jax.random.uniform(ks[5], (4,), jnp.float32, -stdv, stdv)

        # Kernel parameters: fused [W_ih; W_hh] with per-gate columns padded to
        # hp lanes, bf16 for the MXU; biases stay f32.
        w_fused = jnp.concatenate([self.w_ih, self.w_hh], axis=0)       # (in_f+hh, 4*hh)
        w_fused = jnp.pad(w_fused.reshape(in_f + hh, 4, hh),
                          ((0, 0), (0, 0), (0, hp - hh)))
        self.k_w = w_fused.reshape(in_f + hh, 4 * hp).astype(jnp.bfloat16)
        self.k_b = jnp.pad(self.b.reshape(4, hh),
                           ((0, 0), (0, hp - hh))).reshape(1, 4 * hp)
        self.k_wt = jnp.pad(self.w_t, ((0, hp - hh), (0, hp - 4))).astype(jnp.bfloat16)
        self.k_bt = jnp.pad(self.b_t, (0, hp - 4)).reshape(1, hp)

        self.state = None

    def reset_state(self):
        self.state = None

    def run_steps(self, x_seq, h0=None, c0=None):
        """Optimized path: run x_seq.shape[0] steps in one pallas_call."""
        _, B, _ = x_seq.shape
        if h0 is None:
            h0 = jnp.zeros((B, self.state_size), jnp.float32)
        if c0 is None:
            c0 = jnp.zeros((B, self.state_size), jnp.float32)
        return tracker_run(x_seq, h0, c0, self.k_w, self.k_b, self.k_wt, self.k_bt)

    def forward(self, bufs, stacks):
        # NOTE(perf): bundle/unbundle and the tiny per-example concats are kept
        # only for API parity with the PyTorch module; production SPINN should
        # feed batched per-step inputs to run_steps() directly.
        buf_h = bundle(b[-1] for b in bufs)[0]            # (B, size)
        stack1_h = bundle(s[-1] for s in stacks)[0]       # (B, size)
        stack2_h = bundle(s[-2] for s in stacks)[0]       # (B, size)
        x = jnp.concatenate((buf_h, stack1_h, stack2_h), axis=1)  # (B, 3*size)
        B = x.shape[0]
        if self.state is None:
            z = jnp.zeros((B, self.state_size), jnp.float32)
            self.state = (z, z)
        h_seq, c_seq, logit_seq = self.run_steps(x[None],
                                                 self.state[0], self.state[1])
        self.state = (h_seq[0], c_seq[0])
        if self.predict:
            return unbundle(self.state), logit_seq[0]
        return unbundle(self.state), None


# ---------------------------------------------------------------------------
# Pure-JAX reference (same bf16 MXU quantization as the kernel).
# ---------------------------------------------------------------------------
def lstm_ref_step(x, h, c, w_ih, w_hh, b, w_t, b_t):
    hh = h.shape[1]
    xh = jnp.concatenate([x, h], axis=1).astype(jnp.bfloat16)
    w = jnp.concatenate([w_ih, w_hh], axis=0).astype(jnp.bfloat16)
    gates = jnp.dot(xh, w, preferred_element_type=jnp.float32) + b
    i = jax.nn.sigmoid(gates[:, 0 * hh:1 * hh])
    f = jax.nn.sigmoid(gates[:, 1 * hh:2 * hh])
    g = jnp.tanh(gates[:, 2 * hh:3 * hh])
    o = jax.nn.sigmoid(gates[:, 3 * hh:4 * hh])
    c1 = f * c + i * g
    h1 = o * jnp.tanh(c1)
    logits = jnp.dot(h1.astype(jnp.bfloat16), w_t.astype(jnp.bfloat16),
                     preferred_element_type=jnp.float32) + b_t
    return h1, c1, logits


if __name__ == "__main__":
    B = 8              # batch (multiple of 8 keeps f32 sublanes unpadded)
    size = 32          # per-element hidden size (stack entries carry [h | c])
    tracker_size = 32  # LSTM hidden size H
    T = 6              # tracker steps fused into one pallas_call

    root = jax.random.PRNGKey(0)
    k_params, k_seq, k_data = jax.random.split(root, 3)

    tracker = Tracker(size, tracker_size, predict=True, key=k_params)
    tracker.reset_state()

    # --- Optimized path: T steps in ONE kernel launch -----------------------
    x_seq = jax.random.normal(k_seq, (T, B, 3 * size), jnp.float32)
    h_seq, c_seq, logit_seq = tracker.run_steps(x_seq)
    jax.block_until_ready((h_seq, c_seq, logit_seq))

    # Pure-JAX reference check.
    h_r = jnp.zeros((B, tracker_size), jnp.float32)
    c_r = jnp.zeros_like(h_r)
    hs, cs, ls = [], [], []
    for t in range(T):
        h_r, c_r, lg = lstm_ref_step(x_seq[t], h_r, c_r, tracker.w_ih,
                                     tracker.w_hh, tracker.b,
                                     tracker.w_t, tracker.b_t)
        hs.append(h_r); cs.append(c_r); ls.append(lg)
    h_ref, c_ref, l_ref = jnp.stack(hs), jnp.stack(cs), jnp.stack(ls)

    assert jnp.allclose(h_seq, h_ref, atol=2e-2, rtol=2e-2)
    assert jnp.allclose(c_seq, c_ref, atol=2e-2, rtol=2e-2)
    assert jnp.allclose(logit_seq, l_ref, atol=2e-2, rtol=2e-2)

    # --- Module-API path (single step, PyTorch Tracker.forward parity) ------
    dkeys = jax.random.split(k_data, B * 3)
    bufs = [[jax.random.normal(dkeys[3 * b], (1, 2 * size), jnp.float32)]
            for b in range(B)]
    stacks = [[jax.random.normal(dkeys[3 * b + 1], (1, 2 * size), jnp.float32),
               jax.random.normal(dkeys[3 * b + 2], (1, 2 * size), jnp.float32)]
              for b in range(B)]
    new_states, trans_logits = tracker.forward(bufs, stacks)
    jax.block_until_ready(trans_logits)

    assert len(new_states) == B
    assert new_states[0].shape == (1, 2 * tracker_size)
    assert trans_logits.shape == (B, 4)
    print("KERNEL_OK")
</pallas_src>

<mosaic_0001>
module attributes {stable_mosaic.version = 11 : i64} {
  func.func @_tracker_seq_kernel(%arg0: i32, %arg1: memref<1x8x96xf32, #tpu.memory_space<vmem>>, %arg2: memref<8x128xf32, #tpu.memory_space<vmem>>, %arg3: memref<8x128xf32, #tpu.memory_space<vmem>>, %arg4: memref<128x512xbf16, #tpu.memory_space<vmem>>, %arg5: memref<1x512xf32, #tpu.memory_space<vmem>>, %arg6: memref<128x128xbf16, #tpu.memory_space<vmem>>, %arg7: memref<1x128xf32, #tpu.memory_space<vmem>>, %arg8: memref<1x8x128xf32, #tpu.memory_space<vmem>>, %arg9: memref<1x8x128xf32, #tpu.memory_space<vmem>>, %arg10: memref<1x8x128xf32, #tpu.memory_space<vmem>>, %arg11: memref<8x128xf32, #tpu.memory_space<vmem>>, %arg12: memref<8x128xf32, #tpu.memory_space<vmem>>) attributes {dimension_semantics = [#tpu.dimension_semantics<arbitrary>], iteration_bounds = array<i64: 6>, scalar_prefetch = 0 : i64, scratch_operands = 2 : i64, tpu.core_type = #tpu.core_type<tc>, window_params = [{transform_indices = @transform_0, window_bounds = array<i64: 1, 8, 96>}, {pipeline_mode = #tpu.pipeline_mode<synchronous>, transform_indices = @transform_1, window_bounds = array<i64: 8, 128>}, {pipeline_mode = #tpu.pipeline_mode<synchronous>, transform_indices = @transform_2, window_bounds = array<i64: 8, 128>}, {pipeline_mode = #tpu.pipeline_mode<synchronous>, transform_indices = @transform_3, window_bounds = array<i64: 128, 512>}, {pipeline_mode = #tpu.pipeline_mode<synchronous>, transform_indices = @transform_4, window_bounds = array<i64: 1, 512>}, {pipeline_mode = #tpu.pipeline_mode<synchronous>, transform_indices = @transform_5, window_bounds = array<i64: 128, 128>}, {pipeline_mode = #tpu.pipeline_mode<synchronous>, transform_indices = @transform_6, window_bounds = array<i64: 1, 128>}, {transform_indices = @transform_7, window_bounds = array<i64: 1, 8, 128>}, {transform_indices = @transform_8, window_bounds = array<i64: 1, 8, 128>}, {transform_indices = @transform_9, window_bounds = array<i64: 1, 8, 128>}]} {
    %c0_i32 = arith.constant 0 : i32
    %0 = arith.cmpi eq, %arg0, %c0_i32 : i32
    %1 = arith.extui %0 : i1 to i32
    %c0_i32_0 = arith.constant 0 : i32
    %2 = arith.cmpi ne, %1, %c0_i32_0 : i32
    scf.if %2 {
      %c0_33 = arith.constant 0 : index
      %c0_34 = arith.constant 0 : index
      %57 = vector.load %arg3[%c0_33, %c0_34] : memref<8x128xf32, #tpu.memory_space<vmem>>, vector<8x128xf32>
      %c0_35 = arith.constant 0 : index
      %c0_36 = arith.constant 0 : index
      %58 = vector.load %arg12[%c0_35, %c0_36] : memref<8x128xf32, #tpu.memory_space<vmem>>, vector<8x128xf32>
      tpu.vector_store %arg12[%c0_35, %c0_36], %57 {strides = array<i32>} : memref<8x128xf32, #tpu.memory_space<vmem>>, vector<8x128xf32>,
      %c0_37 = arith.constant 0 : index
      %c0_38 = arith.constant 0 : index
      %59 = vector.load %arg2[%c0_37, %c0_38] : memref<8x128xf32, #tpu.memory_space<vmem>>, vector<8x32xf32>
      %c0_39 = arith.constant 0 : index
      %c96_40 = arith.constant 96 : index
      %60 = vector.load %arg11[%c0_39, %c96_40] : memref<8x128xf32, #tpu.memory_space<vmem>>, vector<8x32xf32>
      tpu.vector_store %arg11[%c0_39, %c96_40], %59 {strides = array<i32>} : memref<8x128xf32, #tpu.memory_space<vmem>>, vector<8x32xf32>,
    } else {
    }
    %c0 = arith.constant 0 : index
    %c0_1 = arith.constant 0 : index
    %c0_2 = arith.constant 0 : index
    %3 = vector.load %arg1[%c0, %c0_1, %c0_2] : memref<1x8x96xf32, #tpu.memory_space<vmem>>, vector<1x8x96xf32>
    %4 = vector.shape_cast %3 : vector<1x8x96xf32> to vector<8x96xf32>
    %c0_3 = arith.constant 0 : index
    %c0_4 = arith.constant 0 : index
    %5 = vector.load %arg11[%c0_3, %c0_4] : memref<8x128xf32, #tpu.memory_space<vmem>>, vector<8x96xf32>
    tpu.vector_store %arg11[%c0_3, %c0_4], %4 {strides = array<i32>} : memref<8x128xf32, #tpu.memory_space<vmem>>, vector<8x96xf32>,
    %c0_5 = arith.constant 0 : index
    %c0_6 = arith.constant 0 : index
    %6 = vector.load %arg11[%c0_5, %c0_6] : memref<8x128xf32, #tpu.memory_space<vmem>>, vector<8x128xf32>
    %7 = arith.truncf %6 : vector<8x128xf32> to vector<8x128xbf16>
    %c0_7 = arith.constant 0 : index
    %c0_8 = arith.constant 0 : index
    %8 = vector.load %arg4[%c0_7, %c0_8] : memref<128x512xbf16, #tpu.memory_space<vmem>>, vector<128x512xbf16>
    %cst = arith.constant dense<0.000000e+00> : vector<8x512xf32>
    %9 = tpu.matmul %7, %8, %cst {dimension_numbers = #tpu.dot_dimension_numbers<[1], [0], [0], [1], [0, 0, 1, 1], [], []>} : vector<8x128xbf16>, vector<128x512xbf16>, vector<8x512xf32> -> vector<8x512xf32>
    %c0_9 = arith.constant 0 : index
    %c0_10 = arith.constant 0 : index
    %10 = vector.load %arg5[%c0_9, %c0_10] : memref<1x512xf32, #tpu.memory_space<vmem>>, vector<1x512xf32>
    %11 = vector.broadcast %10 : vector<1x512xf32> to vector<8x512xf32>
    %12 = arith.addf %9, %11 : vector<8x512xf32>
    %13 = vector.extract_strided_slice %12 {offsets = [0, 0], sizes = [8, 128], strides = [1, 1]} : vector<8x512xf32> to vector<8x128xf32>
    %14 = arith.negf %13 : vector<8x128xf32>
    %15 = math.exp %14 : vector<8x128xf32>
    %cst_11 = arith.constant 1.000000e+00 : f32
    %16 = vector.broadcast %cst_11 : f32 to vector<8x128xf32>
    %17 = arith.addf %16, %15 : vector<8x128xf32>
    %18 = arith.divf %16, %17 : vector<8x128xf32>
    %19 = vector.extract_strided_slice %12 {offsets = [0, 128], sizes = [8, 128], strides = [1, 1]} : vector<8x512xf32> to vector<8x128xf32>
    %20 = arith.negf %19 : vector<8x128xf32>
    %21 = math.exp %20 : vector<8x128xf32>
    %cst_12 = arith.constant 1.000000e+00 : f32
    %22 = vector.broadcast %cst_12 : f32 to vector<8x128xf32>
    %23 = arith.addf %22, %21 : vector<8x128xf32>
    %24 = arith.divf %22, %23 : vector<8x128xf32>
    %25 = vector.extract_strided_slice %12 {offsets = [0, 256], sizes = [8, 128], strides = [1, 1]} : vector<8x512xf32> to vector<8x128xf32>
    %26 = math.tanh %25 : vector<8x128xf32>
    %27 = vector.extract_strided_slice %12 {offsets = [0, 384], sizes = [8, 128], strides = [1, 1]} : vector<8x512xf32> to vector<8x128xf32>
    %28 = arith.negf %27 : vector<8x128xf32>
    %29 = math.exp %28 : vector<8x128xf32>
    %cst_13 = arith.constant 1.000000e+00 : f32
    %30 = vector.broadcast %cst_13 : f32 to vector<8x128xf32>
    %31 = arith.addf %30, %29 : vector<8x128xf32>
    %32 = arith.divf %30, %31 : vector<8x128xf32>
    %c0_14 = arith.constant 0 : index
    %c0_15 = arith.constant 0 : index
    %33 = vector.load %arg12[%c0_14, %c0_15] : memref<8x128xf32, #tpu.memory_space<vmem>>, vector<8x128xf32>
    %34 = arith.mulf %24, %33 : vector<8x128xf32>
    %35 = arith.mulf %18, %26 : vector<8x128xf32>
    %36 = arith.addf %34, %35 : vector<8x128xf32>
    %37 = math.tanh %36 : vector<8x128xf32>
    %38 = arith.mulf %32, %37 : vector<8x128xf32>
    %c0_16 = arith.constant 0 : index
    %c0_17 = arith.constant 0 : index
    %39 = vector.load %arg12[%c0_16, %c0_17] : memref<8x128xf32, #tpu.memory_space<vmem>>, vector<8x128xf32>
    tpu.vector_store %arg12[%c0_16, %c0_17], %36 {strides = array<i32>} : memref<8x128xf32, #tpu.memory_space<vmem>>, vector<8x128xf32>,
    %40 = vector.extract_strided_slice %38 {offsets = [0, 0], sizes = [8, 32], strides = [1, 1]} : vector<8x128xf32> to vector<8x32xf32>
    %c0_18 = arith.constant 0 : index
    %c96 = arith.constant 96 : index
    %41 = vector.load %arg11[%c0_18, %c96] : memref<8x128xf32, #tpu.memory_space<vmem>>, vector<8x32xf32>
    tpu.vector_store %arg11[%c0_18, %c96], %40 {strides = array<i32>} : memref<8x128xf32, #tpu.memory_space<vmem>>, vector<8x32xf32>,
    %c0_19 = arith.constant 0 : index
    %c0_20 = arith.constant 0 : index
    %c0_21 = arith.constant 0 : index
    %42 = vector.load %arg8[%c0_19, %c0_20, %c0_21] : memref<1x8x128xf32, #tpu.memory_space<vmem>>, vector<1x8x128xf32>
    %43 = vector.shape_cast %42 : vector<1x8x128xf32> to vector<8x128xf32>
    %44 = vector.shape_cast %38 : vector<8x128xf32> to vector<1x8x128xf32>
    tpu.vector_store %arg8[%c0_19, %c0_20, %c0_21], %44 {strides = array<i32>} : memref<1x8x128xf32, #tpu.memory_space<vmem>>, vector<1x8x128xf32>,
    %c0_22 = arith.constant 0 : index
    %c0_23 = arith.constant 0 : index
    %c0_24 = arith.constant 0 : index
    %45 = vector.load %arg9[%c0_22, %c0_23, %c0_24] : memref<1x8x128xf32, #tpu.memory_space<vmem>>, vector<1x8x128xf32>
    %46 = vector.shape_cast %45 : vector<1x8x128xf32> to vector<8x128xf32>
    %47 = vector.shape_cast %36 : vector<8x128xf32> to vector<1x8x128xf32>
    tpu.vector_store %arg9[%c0_22, %c0_23, %c0_24], %47 {strides = array<i32>} : memref<1x8x128xf32, #tpu.memory_space<vmem>>, vector<1x8x128xf32>,
    %48 = arith.truncf %38 : vector<8x128xf32> to vector<8x128xbf16>
    %c0_25 = arith.constant 0 : index
    %c0_26 = arith.constant 0 : index
    %49 = vector.load %arg6[%c0_25, %c0_26] : memref<128x128xbf16, #tpu.memory_space<vmem>>, vector<128x128xbf16>
    %cst_27 = arith.constant dense<0.000000e+00> : vector<8x128xf32>
    %50 = tpu.matmul %48, %49, %cst_27 {dimension_numbers = #tpu.dot_dimension_numbers<[1], [0], [0], [1], [0, 0, 1, 1], [], []>} : vector<8x128xbf16>, vector<128x128xbf16>, vector<8x128xf32> -> vector<8x128xf32>
    %c0_28 = arith.constant 0 : index
    %c0_29 = arith.constant 0 : index
    %51 = vector.load %arg7[%c0_28, %c0_29] : memref<1x128xf32, #tpu.memory_space<vmem>>, vector<1x128xf32>
    %52 = vector.broadcast %51 : vector<1x128xf32> to vector<8x128xf32>
    %53 = arith.addf %50, %52 : vector<8x128xf32>
    %c0_30 = arith.constant 0 : index
    %c0_31 = arith.constant 0 : index
    %c0_32 = arith.constant 0 : index
    %54 = vector.load %arg10[%c0_30, %c0_31, %c0_32] : memref<1x8x128xf32, #tpu.memory_space<vmem>>, vector<1x8x128xf32>
    %55 = vector.shape_cast %54 : vector<1x8x128xf32> to vector<8x128xf32>
    %56 = vector.shape_cast %53 : vector<8x128xf32> to vector<1x8x128xf32>
    tpu.vector_store %arg10[%c0_30, %c0_31, %c0_32], %56 {strides = array<i32>} : memref<1x8x128xf32, #tpu.memory_space<vmem>>, vector<1x8x128xf32>,
    return
  }
  func.func @transform_0(%arg0: i32) -> (i32, i32, i32) {
    %c0_i32 = arith.constant 0 : i32
    %c0_i32_0 = arith.constant 0 : i32
    %c0_i32_1 = arith.constant 0 : i32
    return %arg0, %c0_i32, %c0_i32_0 : i32, i32, i32
  }
  func.func @transform_1(%arg0: i32) -> (i32, i32) {
    %c0_i32 = arith.constant 0 : i32
    %c0_i32_0 = arith.constant 0 : i32
    %c0_i32_1 = arith.constant 0 : i32
    return %c0_i32, %c0_i32_0 : i32, i32
  }
  func.func @transform_2(%arg0: i32) -> (i32, i32) {
    %c0_i32 = arith.constant 0 : i32
    %c0_i32_0 = arith.constant 0 : i32
    %c0_i32_1 = arith.constant 0 : i32
    return %c0_i32, %c0_i32_0 : i32, i32
  }
  func.func @transform_3(%arg0: i32) -> (i32, i32) {
    %c0_i32 = arith.constant 0 : i32
    %c0_i32_0 = arith.constant 0 : i32
    %c0_i32_1 = arith.constant 0 : i32
    return %c0_i32, %c0_i32_0 : i32, i32
  }
  func.func @transform_4(%arg0: i32) -> (i32, i32) {
    %c0_i32 = arith.constant 0 : i32
    %c0_i32_0 = arith.constant 0 : i32
    %c0_i32_1 = arith.constant 0 : i32
    return %c0_i32, %c0_i32_0 : i32, i32
  }
  func.func @transform_5(%arg0: i32) -> (i32, i32) {
    %c0_i32 = arith.constant 0 : i32
    %c0_i32_0 = arith.constant 0 : i32
    %c0_i32_1 = arith.constant 0 : i32
    return %c0_i32, %c0_i32_0 : i32, i32
  }
  func.func @transform_6(%arg0: i32) -> (i32, i32) {
    %c0_i32 = arith.constant 0 : i32
    %c0_i32_0 = arith.constant 0 : i32
    %c0_i32_1 = arith.constant 0 : i32
    return %c0_i32, %c0_i32_0 : i32, i32
  }
  func.func @transform_7(%arg0: i32) -> (i32, i32, i32) {
    %c0_i32 = arith.constant 0 : i32
    %c0_i32_0 = arith.constant 0 : i32
    %c0_i32_1 = arith.constant 0 : i32
    return %arg0, %c0_i32, %c0_i32_0 : i32, i32, i32
  }
  func.func @transform_8(%arg0: i32) -> (i32, i32, i32) {
    %c0_i32 = arith.constant 0 : i32
    %c0_i32_0 = arith.constant 0 : i32
    %c0_i32_1 = arith.constant 0 : i32
    return %arg0, %c0_i32, %c0_i32_0 : i32, i32, i32
  }
  func.func @transform_9(%arg0: i32) -> (i32, i32, i32) {
    %c0_i32 = arith.constant 0 : i32
    %c0_i32_0 = arith.constant 0 : i32
    %c0_i32_1 = arith.constant 0 : i32
    return %arg0, %c0_i32, %c0_i32_0 : i32, i32, i32
  }
}

</mosaic_0001>

<bundles_post_ra>
// kernel: tracker_run.1
= control target key start
LH: loop header
LB: loop body
LE: loop exit
PB: predicated region body
PF: predicated region fallthrough
CT: control target
= control target key end

     0   :  { %s1824_s0 = inlined_call_operand.hbm [shape: f32[6,8,96], index: 0, kind: input, shape index: {}]   ;;  %s1825_s1 = inlined_call_operand.vmem [shape: f32[8,128], index: 1, kind: input, shape index: {}]   ;;  %s1826_s2 = inlined_call_operand.vmem [shape: f32[8,128], index: 2, kind: input, shape index: {}]   ;;  %s1827_s3 = inlined_call_operand.hbm [shape: bf16[128,512], index: 3, kind: input, shape index: {}]   ;;  %s1828_s4 = inlined_call_operand.vmem [shape: f32[1,512], index: 4, kind: input, shape index: {}]   ;;  %s1829_s5 = inlined_call_operand.hbm [shape: bf16[128,128], index: 5, kind: input, shape index: {}]   ;;  %s1830_s6 = inlined_call_operand.vmem [shape: f32[1,128], index: 6, kind: input, shape index: {}]   ;;  %s1831_s7 = inlined_call_operand.hbm [shape: f32[6,8,128], index: 7, kind: output, shape index: {0}]   ;;  %s1832_s8 = inlined_call_operand.hbm [shape: f32[6,8,128], index: 8, kind: output, shape index: {1}]   ;;  %s1833_s9 = inlined_call_operand.vmem [shape: f32[6,8,128], index: 9, kind: output, shape index: {2}]  }
   0x1   :  { %1840 = sst [smem:[#allocation18_spill]] %s1824_s0 }
   0x2   :  { %1841 = sst [smem:[#allocation19_spill]] %s1825_s1 }
   0x3   :  { %1842 = sst [smem:[#allocation20_spill]] %s1826_s2 }
   0x4   :  { %1843 = sst [smem:[#allocation21_spill]] %s1827_s3 }
   0x5   :  { %15 = vsyncpa [#allocation5], 0 }
   0x6   :  { %17 = vsyncpa [#allocation5 + $0x1], 0 }
   0x7   :  { %18 = vsyncpa [#allocation8], 0 }
   0x8   :  { %19 = vsyncpa [#allocation6], 0 }
   0x9   :  { %21 = vsyncpa [#allocation6 + $0x1], 0 }
   0xa   :  { %22 = vsyncpa [#allocation12], 0 }
   0xb   :  { %24 = vsyncpa [#allocation12 + $0x1], 0  ;;  %s1545_s30 = smov 0   ;;  %s1547_s10 = smov 0  }
   0xc   :  { %s1549_s11 = smov 0   ;;  %s1551_s12 = smov 0  }
   0xd LB: > { %s1566_s13 = sadd.s32 4294967295, %s1479_s12   ;;  %s1044_s14 = sadd.s32 4294967294, %s1479_s12   ;;  %s1479_s12 = sphi %s1551_s12, %s1869_s12   ;;  %s1475_s11 = sphi %s1549_s11, %s1868_s11   ;;  %s1471_s10 = sphi %s1547_s10, %s1867_s10   ;;  %s1467_s30 = sphi %s1545_s30, %s1866_s30  }
   0xe   : > { %p50_p0 = scmp.ne.s32.totalorder %s1471_s10, %s1467_s30  ;;  %p1834_p1 = scmp.eq.s32.totalorder %s1566_s13, 0 }
   0xf   : > { %p206_p3 = scmp.eq.s32.totalorder %s1044_s14, 5  ;;  %p1045_p5 = scmp.ge.s32.totalorder %s1479_s12, 1 }
  0x10   : > { %p1575_p4 = por %p1834_p1, %p50_p0  ;;  %p265_p7 = scmp.lt.s32.totalorder %s1479_s12, 7 }
  0x11   : > { %p1580_p6 = por %p206_p3, %p50_p0  ;;  %s1481_s18 = smov [#allocation7]  }
  0x12   : > { %s1844_s15 = scalar_select %p1575_p4, 1, 0 }
  0x13   : > { %s1845_s16 = scalar_select %p1580_p6, 1, 0 }
  0x14   : > { %p1586_p9 = pnand %p1045_p5, %p265_p7  ;;  %s283_s19 = sshll.u32 %s1481_s18, 4  ;;  %s284_s19 = int_to_ptr.vmem [resolvable:$true] %s283_s19 }
  0x15   : > { %1846 = sst [smem:[#allocation17_spill]] %s1845_s16  ;;  %s1482_s21 = smov [#allocation9]  }
  0x16   : > { %s1847_s17 = scalar_select %p1586_p9, 1, 0 }
  0x17   : > { %p1152_p10 = pneg %p1586_p9  ;;  %s299_s22 = sshll.u32 %s1482_s21, 4  ;;  %s1598_s22 = int_to_ptr.vmem [resolvable:$true] %s299_s22 }
  0x18   : > { %s1849_s3 = sld [smem:[#allocation21_spill]] }
  0x19   : > { %p1594_p11 = pnand %p1152_p10, %p1834_p1 }
  0x1b   : > { %p1293_p13 = pneg %p1594_p11 }
  0x1e   : > { %s1291_s25 = scalar_lea.hbm %s1849_s3, 4096 }
  0x1f   : > { %p1292_p12 = scmp.ne.s32.totalorder %s1849_s3, %s1291_s25  ;;  %p1298_p5 = scmp.lt.u32.totalorder %s1291_s25, %s1849_s3 }
  0x21   : > { %p1294_p0 = pnand %p1293_p13, %p1292_p12 }
  0x23   : > { %p1295_p3 = pneg %p1294_p0 }
  0x25   : > { %p1300_p7 = pnand %p1298_p5, %p1295_p3 }
  0x27   : > { %1303 = shalt.err (!%p1300_p7)
}
  0x28   : > { %s1304_s14 = scalar_lea.vmem %s284_s19, 4096  ;;  %p1312_p2 = scmp.lt.s32.totalorder %s284_s19, %s284_s19 }
  0x29   : > { %p1305_p10 = scmp.ne.s32.totalorder %s284_s19, %s1304_s14  ;;  %p1313_p6 = scmp.lt.s32.totalorder %s1304_s14, %s1304_s14 }
  0x2b   : > { %p1307_p8 = pnand %p1305_p10, %p1293_p13  ;;  %p1314_p4 = por %p1313_p6, %p1312_p2 }
  0x2d   : > { %p1308_p1 = pneg %p1307_p8 }
  0x2f   : > { %p1315_p9 = pnand %p1314_p4, %p1308_p1 }
  0x31   : > { %1318 = shalt.err (!%p1315_p9)
}
  0x32   : > { %s1483_s18 = smov 256   ;;  %s1484_s21 = smov 16  }
  0x33   : > { %1155 = dma.hbm_to_vmem [thread:$0]  (!%p1594_p11), %s1849_s3, 4096, %s284_s19, [#allocation8], %s1483_s18, %s1483_s18, %s1484_s21  }
  0x34   : > { %s1319_s27 = scalar_lea.hbm %s1829_s5, 1024 }
  0x35   : > { %p1320_p8 = scmp.ne.s32.totalorder %s1829_s5, %s1319_s27  ;;  %p1326_p4 = scmp.lt.u32.totalorder %s1319_s27, %s1829_s5 }
  0x37   : > { %p1322_p1 = pnand %p1320_p8, %p1293_p13 }
  0x39   : > { %p1323_p2 = pneg %p1322_p1 }
  0x3b   : > { %p1328_p6 = pnand %p1326_p4, %p1323_p2 }
  0x3d   : > { %1331 = shalt.err (!%p1328_p6)
}
  0x3e   : > { %s1332_s19 = scalar_lea.vmem %s1598_s22, 1024  ;;  %p1340_p3 = scmp.lt.s32.totalorder %s1598_s22, %s1598_s22 }
  0x3f   : > { %p1333_p9 = scmp.ne.s32.totalorder %s1598_s22, %s1332_s19  ;;  %p1341_p5 = scmp.lt.s32.totalorder %s1332_s19, %s1332_s19 }
  0x41   : > { %p1335_p12 = pnand %p1333_p9, %p1293_p13  ;;  %p1342_p7 = por %p1341_p5, %p1340_p3 }
  0x43   : > { %p1336_p0 = pneg %p1335_p12 }
  0x45   : > { %p1343_p10 = pnand %p1342_p7, %p1336_p0 }
  0x47   : > { %1346 = shalt.err (!%p1343_p10)
}
  0x48   : > { %s1485_s16 = smov 64   ;;  %s1486_s18 = smov 4  }
  0x49   : > { %1158 = dma.hbm_to_vmem [thread:$0]  (!%p1594_p11), %s1829_s5, 1024, %s1598_s22, [#allocation8], %s1485_s16, %s1485_s16, %s1486_s18  }
  0x4a   : > { %s1648_s24 = sadd.s32 1, %s1479_s12   ;;  %s37_s26 = sadd.s32 1, %s1475_s11 }
  0x4b   : > { %s34_s25 = ssub.s32 %s1479_s12, %s1648_s24  ;;  %p44_p8 = scmp.ne.s32.totalorder %s1475_s11, %s1471_s10 }
  0x4c   : > { %p35_p13 = scmp.eq.s32.totalorder %s34_s25, 0  ;;  %p45_p1 = scmp.eq.s32.totalorder %s1479_s12, 0 }
  0x4d   : > { %p1850_p4 = scmp.eq.s32.totalorder %s1566_s13, 5  ;;  %p1172_p9 = scmp.lt.s32.totalorder %s1479_s12, 6 }
  0x4e   : > { %s1657_s27 = scalar_select %p35_p13, %s1475_s11, %s37_s26  }
  0x4f   : > { %p46_p2 = por %p45_p1, %p44_p8  ;;  %p1661_p6 = por %p1850_p4, %p44_p8 }
  0x50   : > { %s316_s20 = sand.u32 1, %s1475_s11   ;;  %s1050_s22 = sshll.u32 %s1479_s12, 7 }
  0x51   : > { %s1049_s29 = sshll.u32 %s316_s20, 3  ;;  %s1852_s0 = sld [smem:[#allocation18_spill]] }
  0x52   : > { %s320_s18 = scalar_lea.vmem [#allocation4], %s1049_s29  ;;  %p1675_p11 = pnand %p1172_p9, %p46_p2 }
  0x53   : > { %s327_s21 = sshll.u32 %s320_s18, 4  ;;  %s317_s25 = scalar_lea.sflag [#allocation5], %s316_s20  ;;  %s1673_s21 = int_to_ptr.vmem [resolvable:$true] %s327_s21 }
  0x54   : > { %p1349_p0 = pneg %p1675_p11 }
  0x57   : > { %s1671_s16 = scalar_lea.hbm %s1852_s0, %s1050_s22  ;;  %s1352_s14 = scalar_lea.hbm %s1852_s0, 768 }
  0x58   : > { %s1347_s26 = scalar_lea.hbm %s1671_s16, 128  ;;  %p1353_p7 = scmp.lt.u32.totalorder %s1671_s16, %s1852_s0 }
  0x59   : > { %p1348_p12 = scmp.ne.s32.totalorder %s1671_s16, %s1347_s26  ;;  %p1354_p10 = scmp.lt.u32.totalorder %s1352_s14, %s1347_s26 }
  0x5a   : > { %p1356_p8 = scmp.lt.u32.totalorder %s1347_s26, %s1671_s16 }
  0x5b   : > { %p1350_p3 = pnand %p1349_p0, %p1348_p12  ;;  %p1355_p13 = por %p1354_p10, %p1353_p7 }
  0x5d   : > { %p1351_p5 = pneg %p1350_p3  ;;  %p1357_p1 = por %p1356_p8, %p1355_p13 }
  0x5f   : > { %p1358_p2 = pnand %p1357_p1, %p1351_p5 }
  0x61   : > { %1361 = shalt.err (!%p1358_p2)
}
  0x62   : > { %s1362_s20 = scalar_lea.vmem %s1673_s21, 128  ;;  %s1487_s22 = smov [#allocation4]  }
  0x63   : > { %p1363_p4 = scmp.ne.s32.totalorder %s1673_s21, %s1362_s20  ;;  %s1367_s29 = sshll.u32 %s1487_s22, 4  ;;  %s1368_s29 = int_to_ptr.vmem [resolvable:$false] %s1367_s29 }
  0x64   : > { %s1369_s19 = scalar_lea.vmem %s1368_s29, 256  ;;  %p1370_p3 = scmp.lt.s32.totalorder %s1673_s21, %s1368_s29 }
  0x65   : > { %p1365_p9 = pnand %p1363_p4, %p1349_p0  ;;  %p1371_p7 = scmp.lt.s32.totalorder %s1369_s19, %s1362_s20 }
  0x67   : > { %p1366_p12 = pneg %p1365_p9  ;;  %p1372_p10 = por %p1371_p7, %p1370_p3 }
  0x69   : > { %p1373_p13 = pnand %p1372_p10, %p1366_p12 }
  0x6b   : > { %1376 = shalt.err (!%p1373_p13)
}
  0x6c   : > { %1162 = dma.hbm_to_vmem [thread:$0]  (!%p1675_p11), %s1671_s16, 128, %s1673_s21, %s317_s25  }
  0x6d   : > { %p1854_p5 = scmp.ne.s32.totalorder %s1847_s17, 0 }
  0x6e   : > { %s1707_s26 = sand.u32 (!%p1854_p5), 1, %s1471_s10   ;;  %p1855_p0 = scmp.ne.s32.totalorder (!%p1854_p5), %s1844_s15, 0 }
  0x6f   : > { %336 = sbr.rel (%p1854_p5) target bundleno = 758 (0x2f6), region = 48  ;;  %s1710_s14 = sshll.u32 (!%p1854_p5), %s1707_s26, 3 }
  0x70   : > { %s339_s18 = scalar_lea.sflag (!%p1854_p5), [#allocation5], %s1707_s26 }
  0x76   : > { %1450 = dma.done.wait (%p1855_p0), %s339_s18, 128  }
  0x77   : > { %1452 = vsyncadd (%p1855_p0), %s339_s18, 4294967168  ;;  %p1856_p11 = scmp.eq.s32.totalorder %s1566_s13, 0 }
  0x79   : > { %1454 = dma.done.wait (%p1856_p11), [#allocation8], 5120   ;;  %p1857_p8 = pmov %p1856_p11 }
  0x7a   : > { %p394_p1 = scmp.lt.s32.totalorder %s1566_s13, 5  ;;  %s380_s15 = scalar_lea.vmem [#allocation10], %s1710_s14 }
  0x7b   : > { %1456 = vsyncadd (%p1857_p8), [#allocation8], 4294962176  ;;  %s1838_s22 = scalar_lea.vmem [#allocation11], %s1710_s14  ;;  %p1858_p2 = scmp.ne.s32.totalorder %s1566_s13, 0 }
  0x7c   : > { %s395_s17 = scalar_select %p394_p1, %s1566_s13, 5 }
  0x7d   : > { %402 = sbr.rel (%p1858_p2) target bundleno = 249 (0xf9), region = 64  ;;  %s1859_s2 = sld [smem:[#allocation20_spill]] (!%p1858_p2)  ;;  %vm410_vm0 = vcmask (!%p1858_p2), 1048320  }
  0x7e   : > { %s1057_s16 = sshll.u32 %s395_s17, 3  ;;  %s1860_s1 = sld [smem:[#allocation19_spill]] (!%p1858_p2) }
  0x7f   : > { %s1727_s25 = scalar_lea.vmem %s1833_s9, %s1057_s16  ;;  %s1488_s17 = smov (!%p1858_p2), 96  }
  0x83   : > { %v403_v0 = vld [vmem:[%s1859_s2] sm:$0xff] (!%p1858_p2) }
  0x84   : > { %v405_v1 = vld [vmem:[%s1860_s1] sm:$0xff]  ;;  %404 = vst [vmem:[#allocation3] sm:$0xff] %v403_v0 }
  0x85   : > { %407 = vrot.lane.b32.xlu0 %v405_v1, %s1488_s17 }
  0xf7   : > { %v408_v2 = vpop.permute.xlu0 %407 }
  0xf8   : > { %411 = vst.msk [vmem:[#allocation2] sm:$0xff] %vm410_vm0, %v408_v2 }
  0xf9 PF: > { %v1219_v3 = vld [vmem:[#allocation7 + $0x4] ss:$16 sps:$4 sm:$0xff]   ;;  %v1221_v4 = vld [vmem:[#allocation7] ss:$16 sps:$4 sm:$0xff]   ;;  %v1489_v5 = vmov 0   ;;  %vm413_vm1 = vcmask 785408   ;;  %v451_v48 = vlaneseq }
  0xfa   : > { %663 = vmatprep.mubr.bf16.mxu0 %v1489_v5  ;;  %704 = vmatprep.mubr.bf16.mxu1 %v1489_v5  ;;  %v1222_v6 = vld [vmem:[#allocation7 + $0x24] ss:$16 sps:$4 sm:$0xff]   ;;  %v1224_v7 = vld [vmem:[#allocation7 + $0x20] ss:$16 sps:$4 sm:$0xff]   ;;  %v1230_v9 = vld [vmem:[#allocation7 + $0xc] ss:$16 sps:$4 sm:$0xff]  }
  0xfb   : > { %631 = vmatprep.subr.bf16.mxu0 %v1219_v3  ;;  %v1225_v8 = vld [vmem:[#allocation7 + $0x44] ss:$16 sps:$4 sm:$0xff]   ;;  %v1233_v10 = vld [vmem:[#allocation7 + $0x8] ss:$16 sps:$4 sm:$0xff]   ;;  %v1227_v11 = vld [vmem:[#allocation7 + $0x40] ss:$16 sps:$4 sm:$0xff]   ;;  %672 = vmatprep.subr.bf16.mxu1 %v1230_v9 }
  0xfc   : > { %632 = vmatpush1.bf16.msra.mxu0 %v1221_v4  ;;  %v1228_v12 = vld [vmem:[#allocation7 + $0x64] ss:$16 sps:$4 sm:$0xff]   ;;  %673 = vmatpush1.bf16.msra.mxu1 %v1233_v10  ;;  %v1236_v13 = vld [vmem:[#allocation7 + $0x2c] ss:$16 sps:$4 sm:$0xff]   ;;  %v1239_v14 = vld [vmem:[#allocation7 + $0x28] ss:$16 sps:$4 sm:$0xff]  }
  0xfd   : > { %633 = vmatprep.subr.bf16.mxu0 %v1222_v6  ;;  %674 = vmatprep.subr.bf16.mxu1 %v1236_v13  ;;  %v1232_v15 = vld [vmem:[#allocation7 + $0x60] ss:$16 sps:$4 sm:$0xff]   ;;  %v1234_v16 = vld [vmem:[#allocation7 + $0x84] ss:$16 sps:$4 sm:$0xff]   ;;  %v1242_v17 = vld [vmem:[#allocation7 + $0x4c] ss:$16 sps:$4 sm:$0xff]  }
  0xfe   : > { %v1245_v18 = vld [vmem:[#allocation7 + $0x48] ss:$16 sps:$4 sm:$0xff]   ;;  %v1248_v19 = vld [vmem:[#allocation7 + $0x6c] ss:$16 sps:$4 sm:$0xff]   ;;  %v1238_v20 = vld [vmem:[#allocation7 + $0x80] ss:$16 sps:$4 sm:$0xff]  }
  0xff   : > { %v1240_v21 = vld [vmem:[#allocation7 + $0xa4] ss:$16 sps:$4 sm:$0xff]   ;;  %v1251_v22 = vld [vmem:[#allocation7 + $0x68] ss:$16 sps:$4 sm:$0xff]   ;;  %v1254_v23 = vld [vmem:[#allocation7 + $0x8c] ss:$16 sps:$4 sm:$0xff]  }
 0x100   : > { %634 = vmatpush1.bf16.msra.mxu0 %v1224_v7  ;;  %675 = vmatpush1.bf16.msra.mxu1 %v1239_v14  ;;  %s1861_s20 = scalar_lea.vmem [#allocation4], %s1710_s14  ;;  %v1244_v25 = vld [vmem:[#allocation7 + $0xa0] ss:$16 sps:$4 sm:$0xff]   ;;  %v1246_v26 = vld [vmem:[#allocation7 + $0xc4] ss:$16 sps:$4 sm:$0xff]   ;;  %v1490_v40 = vmov 0.0  }
 0x101   : > { %635 = vmatprep.subr.bf16.mxu0 %v1225_v8  ;;  %676 = vmatprep.subr.bf16.mxu1 %v1242_v17  ;;  %v412_v24 = vld [vmem:[%s1861_s20] sm:$0xff]  ;;  %v1267_v39 = vld [vmem:[#allocation9] sm:$0xff]   ;;  %v1268_v41 = vld [vmem:[#allocation9 + $0x8] sm:$0xff]   ;;  %vm1491_vm2 = vmmov 0   ;;  %v452_v49 = vshrl.u32 %v451_v48, 7  ;;  %s1492_s23 = smov 96  }
 0x102   : > { %414 = vst.msk [vmem:[#allocation2] sm:$0xff] %vm413_vm1, %v412_v24  ;;  %v1257_v27 = vld [vmem:[#allocation7 + $0x88] ss:$16 sps:$4 sm:$0xff]   ;;  %v1250_v28 = vld [vmem:[#allocation7 + $0xc0] ss:$16 sps:$4 sm:$0xff]   ;;  %s1839_s29 = sshll.u32 %s1566_s13, 7 }
 0x103   : > { %v1258_v29 = vld [vmem:[#allocation7 + $0xac] ss:$16 sps:$4 sm:$0xff]   ;;  %v1252_v30 = vld [vmem:[#allocation7 + $0xe4] ss:$16 sps:$4 sm:$0xff]   ;;  %v1260_v31 = vld [vmem:[#allocation7 + $0xa8] ss:$16 sps:$4 sm:$0xff]   ;;  %s1756_s20 = scalar_lea.hbm %s1831_s7, %s1839_s29 }
 0x104   : > { %636 = vmatpush1.bf16.msra.mxu0 %v1227_v11  ;;  %677 = vmatpush1.bf16.msra.mxu1 %v1245_v18  ;;  %v1256_v32 = vld [vmem:[#allocation7 + $0xe0] ss:$16 sps:$4 sm:$0xff]   ;;  %v1261_v33 = vld [vmem:[#allocation7 + $0xcc] ss:$16 sps:$4 sm:$0xff]   ;;  %v1263_v35 = vld [vmem:[#allocation7 + $0xc8] ss:$16 sps:$4 sm:$0xff]  }
 0x105   : > { %637 = vmatprep.subr.bf16.mxu0 %v1228_v12  ;;  %678 = vmatprep.subr.bf16.mxu1 %v1248_v19  ;;  %v1264_v36 = vld [vmem:[#allocation7 + $0xec] ss:$16 sps:$4 sm:$0xff]   ;;  %v1266_v38 = vld [vmem:[#allocation7 + $0xe8] ss:$16 sps:$4 sm:$0xff]   ;;  %v1269_v42 = vld [vmem:[#allocation9 + $0x10] sm:$0xff]   ;;  %v453_v50 = vsub.s32 0, %v452_v49 }
 0x106   : > { %v1270_v43 = vld [vmem:[#allocation9 + $0x18] sm:$0xff]   ;;  %v1271_v44 = vld [vmem:[#allocation9 + $0x20] sm:$0xff]   ;;  %v1272_v45 = vld [vmem:[#allocation9 + $0x28] sm:$0xff]   ;;  %v457_v52 = vsub.s32 1, %v452_v49  ;;  %v465_v55 = vsub.s32 3, %v452_v49  ;;  %v461_v1 = vsub.s32 2, %v452_v49 }
 0x107   : > { %v1273_v46 = vld [vmem:[#allocation9 + $0x30] sm:$0xff]   ;;  %v1274_v47 = vld [vmem:[#allocation9 + $0x38] sm:$0xff]   ;;  %v449_v51 = vld [vmem:[%s1828_s4] sm:$0xf]  ;;  %s883_s19 = sshll.u32 %s380_s15, 4  ;;  %s861_s16 = scalar_lea.sflag [#allocation6], %s1707_s26  ;;  %s884_s19 = int_to_ptr.vmem [resolvable:$true] %s883_s19 }
 0x108   : > { %638 = vmatpush1.bf16.msra.mxu0 %v1232_v15  ;;  %679 = vmatpush1.bf16.msra.mxu1 %v1251_v22  ;;  %v454_v53 = vrot.slane %v449_v51, %v453_v50  ;;  %v458_v54 = vrot.slane %v449_v51, %v457_v52  ;;  %v466_v63 = vrot.slane %v449_v51, %v465_v55  ;;  %s1377_s21 = scalar_lea.vmem %s884_s19, 128 }
 0x109   : > { %639 = vmatprep.subr.bf16.mxu0 %v1234_v16  ;;  %680 = vmatprep.subr.bf16.mxu1 %v1254_v23  ;;  %v415_v34 = vld [vmem:[#allocation2] sm:$0xff]  ;;  %v462_v6 = vrot.slane %v449_v51, %v461_v1  ;;  %v732_v16 = vld [vmem:[#allocation3] sm:$0xff]  ;;  %p1378_p4 = scmp.ne.s32.totalorder %s884_s19, %s1377_s21 }
 0x10a   : > { %v416_v37 = vpack.c.bf16 %v415_v34, %v415_v34 }
 0x10b   : > { %p1379_p9 = pnand %p1378_p4, %p1661_p6 }
 0x10c   : > { %640 = vmatpush1.bf16.msra.mxu0 %v1238_v20  ;;  %681 = vmatpush1.bf16.msra.mxu1 %v1257_v27 }
 0x10d   : > { %641 = vmatprep.subr.bf16.mxu0 %v1240_v21  ;;  %682 = vmatprep.subr.bf16.mxu1 %v1258_v29  ;;  %p1380_p12 = pneg %p1379_p9 }
 0x110   : > { %642 = vmatpush1.bf16.msra.mxu0 %v1244_v25  ;;  %683 = vmatpush1.bf16.msra.mxu1 %v1260_v31 }
 0x111   : > { %643 = vmatprep.subr.bf16.mxu0 %v1246_v26  ;;  %684 = vmatprep.subr.bf16.mxu1 %v1261_v33 }
 0x114   : > { %644 = vmatpush1.bf16.msra.mxu0 %v1250_v28  ;;  %685 = vmatpush1.bf16.msra.mxu1 %v1263_v35 }
 0x115   : > { %645 = vmatprep.subr.bf16.mxu0 %v1252_v30  ;;  %686 = vmatprep.subr.bf16.mxu1 %v1264_v36 }
 0x118   : > { %646 = vmatpush1.bf16.msra.mxu0 %v1256_v32  ;;  %687 = vmatpush1.bf16.msra.mxu1 %v1266_v38 }
 0x119   : > { %1118 = vmatprep.subr.bf16.mxu0 %v1490_v40 }
 0x11b   : > { %664 = vmatmul.mubr.bf16.vlgmr.msra.gmra.mrb[0].mxu0 %v416_v37  ;;  %705 = vmatmul.mubr.bf16.vlgmr.msra.gmra.mrb[0].mxu1 %v416_v37 }
 0x11c   : > { %1119 = vmatpush3.bf16.msra.mxu0 %v1267_v39  ;;  %1134 = vmatprep.mubr.msk.bf16.mxu0 %vm1491_vm2, %v1490_v40 }
 0x11d   : > { %1120 = vmatprep.subr.bf16.mxu0 %v1490_v40 }
 0x120   : > { %1121 = vmatpush3.bf16.msra.mxu0 %v1268_v41 }
 0x121   : > { %1122 = vmatprep.subr.bf16.mxu0 %v1490_v40 }
 0x124   : > { %1123 = vmatpush3.bf16.msra.mxu0 %v1269_v42 }
 0x125   : > { %1124 = vmatprep.subr.bf16.mxu0 %v1490_v40 }
 0x128   : > { %1125 = vmatpush3.bf16.msra.mxu0 %v1270_v43 }
 0x129   : > { %1126 = vmatprep.subr.bf16.mxu0 %v1490_v40 }
 0x12c   : > { %1127 = vmatpush3.bf16.msra.mxu0 %v1271_v44 }
 0x12d   : > { %1128 = vmatprep.subr.bf16.mxu0 %v1490_v40 }
 0x130   : > { %1129 = vmatpush3.bf16.msra.mxu0 %v1272_v45 }
 0x131   : > { %1130 = vmatprep.subr.bf16.mxu0 %v1490_v40 }
 0x134   : > { %1131 = vmatpush3.bf16.msra.mxu0 %v1273_v46 }
 0x135   : > { %1132 = vmatprep.subr.bf16.mxu0 %v1490_v40 }
 0x138   : > { %1133 = vmatpush3.bf16.msra.mxu0 %v1274_v47 }
 0x1ee   : > { %v665_v56 = vpop.f32.mrb[0].mxu0  ;;  %v706_v2 = vpop.f32.mrb[0].mxu1 }
 0x1ef   : > { %v666_v57 = vadd.f32 %v665_v56, %v454_v53  ;;  %v667_v58 = vpop.f32.mrb[1].mxu0  ;;  %v708_v3 = vpop.f32.mrb[1].mxu1  ;;  %v707_v9 = vadd.f32 %v706_v2, %v462_v6 }
 0x1f0   : > { %v668_v59 = vadd.f32 %v667_v58, %v458_v54  ;;  %v669_v60 = vpop.f32.mrb[2].mxu0  ;;  %v709_v4 = vadd.f32 %v708_v3, %v466_v63  ;;  %v710_v5 = vpop.f32.mrb[2].mxu1 }
 0x1f1   : > { %v1091_v61 = vmul.f32 -1.442695, %v666_v57  ;;  %v670_v62 = vpop.f32.mrb[3].mxu0  ;;  %v711_v7 = vpop.f32.mrb[3].mxu1 }
 0x1f2   : > { %v1092_v0 = vmul.f32 -1.442695, %v668_v59  ;;  %v1093_v8 = vmul.f32 -1.442695, %v709_v4 }
 0x1f3   : > { %1275 = vpow2.f32 %v1091_v61 }
 0x1f4   : > { %1277 = vpow2.f32 %v1092_v0 }
 0x1f5   : > { %1279 = vpow2.f32 %v1093_v8 }
 0x1f6   : > { %1281 = vtanh.f32 %v707_v9 }
 0x1fd   : > { %v1276_v10 = vpop.eup %1275 }
 0x1fe   : > { %v1278_v11 = vpop.eup %1277  ;;  %v716_v12 = vadd.f32 1.0, %v1276_v10 }
 0x1ff   : > { %v722_v13 = vadd.f32 1.0, %v1278_v11  ;;  %v1280_v14 = vpop.eup %1279 }
 0x200   : > { %1283 = vrcp.f32 %v716_v12  ;;  %v1282_v15 = vpop.eup %1281  ;;  %v729_v18 = vadd.f32 1.0, %v1280_v14 }
 0x201   : > { %1285 = vrcp.f32 %v722_v13 }
 0x202   : > { %1287 = vrcp.f32 %v729_v18 }
 0x20a   : > { %v1284_v17 = vpop.eup %1283 }
 0x20b   : > { %v1286_v19 = vpop.eup %1285  ;;  %v734_v20 = vmul.f32 %v1284_v17, %v1282_v15 }
 0x20c   : > { %v733_v21 = vmul.f32 %v1286_v19, %v732_v16  ;;  %v1288_v23 = vpop.eup %1287 }
 0x20e   : > { %v735_v22 = vadd.f32 %v734_v20, %v733_v21 }
 0x210   : > { %738 = vst [vmem:[#allocation3] sm:$0xff] %v735_v22  ;;  %746 = vst [vmem:[%s1838_s22] sm:$0xff] %v735_v22  ;;  %1289 = vtanh.f32 %v735_v22 }
 0x21a   : > { %v1290_v24 = vpop.eup %1289 }
 0x21b   : > { %v737_v25 = vmul.f32 %v1290_v24, %v1288_v23 }
 0x21d   : > { %740 = vrot.lane.b32.xlu0 %v737_v25, %s1492_s23  ;;  %745 = vst [vmem:[%s380_s15] sm:$0xff] %v737_v25  ;;  %v747_v26 = vpack.c.bf16 %v737_v25, %v737_v25  ;;  %s1493_s23 = smov [#allocation10]  }
 0x21e   : > { %s1381_s22 = sshll.u32 %s1493_s23, 4  ;;  %s1382_s22 = int_to_ptr.vmem [resolvable:$false] %s1381_s22 }
 0x21f   : > { %1135 = vmatmul.mubr.bf16.vlgmr.msra.gmra.mrb[4].mxu0 %v747_v26  ;;  %s1383_s0 = scalar_lea.vmem %s1382_s22, 256  ;;  %p1384_p3 = scmp.lt.s32.totalorder %s884_s19, %s1382_s22 }
 0x220   : > { %p1385_p7 = scmp.lt.s32.totalorder %s1383_s0, %s1377_s21 }
 0x222   : > { %p1386_p10 = por %p1385_p7, %p1384_p3 }
 0x224   : > { %p1387_p13 = pnand %p1386_p10, %p1380_p12 }
 0x226   : > { %1390 = shalt.err (!%p1387_p13)
}
 0x227   : > { %s1391_s15 = scalar_lea.hbm %s1756_s20, 128  ;;  %s1395_s23 = scalar_lea.hbm %s1831_s7, 768 }
 0x228   : > { %p1392_p5 = scmp.ne.s32.totalorder %s1756_s20, %s1391_s15  ;;  %p1396_p8 = scmp.lt.u32.totalorder %s1756_s20, %s1831_s7 }
 0x229   : > { %p1397_p1 = scmp.lt.u32.totalorder %s1395_s23, %s1391_s15  ;;  %p1399_p4 = scmp.lt.u32.totalorder %s1391_s15, %s1756_s20 }
 0x22a   : > { %p1393_p0 = pnand %p1392_p5, %p1661_p6 }
 0x22b   : > { %p1398_p2 = por %p1397_p1, %p1396_p8 }
 0x22c   : > { %p1394_p11 = pneg %p1393_p0 }
 0x22d   : > { %p1400_p9 = por %p1399_p4, %p1398_p2 }
 0x22f   : > { %p1401_p12 = pnand %p1400_p9, %p1394_p11 }
 0x231   : > { %1404 = shalt.err (!%p1401_p12)
}
 0x232   : > { %1148 = dma.vmem_to_hbm [thread:$0]  (%p1661_p6), %s884_s19, 128, %s1756_s20, %s861_s16  }
 0x233   : > { %s1862_s0 = sshll.u32 %s1566_s13, 7  ;;  %s1863_s17 = scalar_lea.vmem [#allocation11], %s1710_s14 }
 0x234   : > { %s1781_s29 = scalar_lea.hbm %s1832_s8, %s1862_s0  ;;  %s896_s23 = sshll.u32 %s1863_s17, 4  ;;  %s897_s23 = int_to_ptr.vmem [resolvable:$true] %s896_s23 }
 0x235   : > { %s866_s15 = scalar_lea.sflag [#allocation12], %s1707_s26  ;;  %s1405_s22 = scalar_lea.vmem %s897_s23, 128 }
 0x236   : > { %p1406_p3 = scmp.ne.s32.totalorder %s897_s23, %s1405_s22  ;;  %s1494_s1 = smov [#allocation11]  }
 0x237   : > { %s1409_s2 = sshll.u32 %s1494_s1, 4  ;;  %s1410_s2 = int_to_ptr.vmem [resolvable:$false] %s1409_s2 }
 0x238   : > { %p1407_p7 = pnand %p1406_p3, %p1661_p6  ;;  %s1411_s3 = scalar_lea.vmem %s1410_s2, 256 }
 0x239   : > { %p1412_p13 = scmp.lt.s32.totalorder %s897_s23, %s1410_s2  ;;  %p1413_p5 = scmp.lt.s32.totalorder %s1411_s3, %s1405_s22 }
 0x23a   : > { %p1408_p10 = pneg %p1407_p7 }
 0x23b   : > { %p1414_p0 = por %p1413_p5, %p1412_p13 }
 0x23d   : > { %p1415_p11 = pnand %p1414_p0, %p1408_p10 }
 0x23f   : > { %1418 = shalt.err (!%p1415_p11)
}
 0x240   : > { %s1419_s13 = scalar_lea.hbm %s1781_s29, 128  ;;  %s1423_s1 = scalar_lea.hbm %s1832_s8, 768 }
 0x241   : > { %p1420_p8 = scmp.ne.s32.totalorder %s1781_s29, %s1419_s13  ;;  %p1424_p4 = scmp.lt.u32.totalorder %s1781_s29, %s1832_s8 }
 0x242   : > { %p1425_p9 = scmp.lt.u32.totalorder %s1423_s1, %s1419_s13  ;;  %p1427_p3 = scmp.lt.u32.totalorder %s1419_s13, %s1781_s29 }
 0x243   : > { %p1421_p1 = pnand %p1420_p8, %p1661_p6 }
 0x244   : > { %p1426_p12 = por %p1425_p9, %p1424_p4 }
 0x245   : > { %p1422_p2 = pneg %p1421_p1 }
 0x246   : > { %p1428_p7 = por %p1427_p3, %p1426_p12 }
 0x248   : > { %p1429_p10 = pnand %p1428_p7, %p1422_p2 }
 0x24a   : > { %1432 = shalt.err (!%p1429_p10)
}
 0x24b   : > { %1149 = dma.vmem_to_hbm [thread:$0]  (%p1661_p6), %s897_s23, 128, %s1781_s29, %s866_s15   ;;  %vm743_vm3 = vcmask 1048320   ;;  %v1094_v28 = vld [vmem:[%s1830_s6] ss:$0 sm:$0xff] }
 0x28f   : > { %v741_v27 = vpop.permute.xlu0 %740 }
 0x290   : > { %744 = vst.msk [vmem:[#allocation2] sm:$0xff] %vm743_vm3, %v741_v27 }
 0x2f2   : > { %v853_v29 = vpop.f32.mrb[4].mxu0 }
 0x2f3   : > { %v854_v30 = vadd.f32 %v1094_v28, %v853_v29  ;;  %v1136_v31 = vpop.f32.mrb[5].mxu0 }
 0x2f4   : > { %v856_v32 = vpop.f32.mrb[6].mxu0 }
 0x2f5   : > { %859 = vst [vmem:[%s1727_s25] sm:$0xff] %v854_v30  ;;  %v1137_v33 = vpop.f32.mrb[7].mxu0 }
 0x2f6 PF: > { %s1864_s28 = sld [smem:[#allocation17_spill]]  ;;  %p1175_p13 = scmp.ge.s32.totalorder %s1479_s12, 2 }
 0x2f7   : > { %s911_s16 = sand.u32 1, %s1467_s30  }
 0x2f8   : > { %s912_s0 = scalar_lea.sflag [#allocation6], %s911_s16 }
 0x2fc   : > { %p1865_p6 = scmp.ne.s32.totalorder %s1864_s28, 0 }
 0x2fe   : > { %p1164_p5 = pnand %p1175_p13, %p1865_p6 }
 0x300   : > { %1458 = dma.done.wait (!%p1164_p5), %s912_s0, 128  }
 0x301   : > { %1460 = vsyncadd (!%p1164_p5), %s912_s0, 4294967168  ;;  %s921_s21 = scalar_lea.sflag [#allocation12], %s911_s16 }
 0x302   : > { %1462 = dma.done.wait (!%p1164_p5), %s921_s21, 128  }
 0x303   : > { %1464 = vsyncadd (!%p1164_p5), %s921_s21, 4294967168  ;;  %p27_p0 = scmp.ge.s32.totalorder %s1648_s24, 8   ;;  %s1866_s30 = smov %s1471_s10 }
 0x304   : > { %s1867_s10 = smov %s1475_s11  ;;  %s1868_s11 = smov %s1657_s27 }
 0x305   : > { %s1869_s12 = smov %s1648_s24  ;;  %29 = sbr.rel (!%p27_p0) target bundleno = 13 (0xd), region = 134 }
 0x30c   :  { %933 = vsyncpa [#allocation5], 1 }
 0x30d   :  { %935 = vsyncpa [#allocation5 + $0x1], 1 }
 0x30e   :  { %936 = vsyncpa [#allocation8], 1 }
 0x30f   :  { %937 = vsyncpa [#allocation6], 1 }
 0x310   :  { %939 = vsyncpa [#allocation6 + $0x1], 1 }
 0x311   :  { %940 = vsyncpa [#allocation12], 1 }
 0x312   :  { %942 = vsyncpa [#allocation12 + $0x1], 1 }

</bundles_post_ra>
